<compile_context>
chip_gen: v5e
topology: v5e:2x2
jax: 0.10.0
libtpu: 0.0.40
codegen_flags: <defaults>
</compile_context>

<pallas_src>
import jax
import jax.numpy as jnp
from jax.experimental import pallas as pl
from jax.experimental.pallas import tpu as pltpu


def _encoder_kernel(x_ref,
                    w1_ref, b1_ref,
                    w2_ref, b2_ref,
                    w3_ref, b3_ref,
                    wh_ref, bh_ref,
                    out_ref):
    # x_ref: (TB, 784) f32 batch tile; cast to bf16 in-kernel (VPU work hidden
    # under the MXU/DMA slack) so the wrapper does not add an extra HBM pass.
    x = x_ref[...].astype(jnp.bfloat16)

    h1 = jnp.dot(x, w1_ref[...], preferred_element_type=jnp.float32)       # (TB, 256)
    h1 = jnp.maximum(h1 + b1_ref[...], 0.0)

    h2 = jnp.dot(h1.astype(jnp.bfloat16), w2_ref[...],
                 preferred_element_type=jnp.float32)                       # (TB, 128)
    h2 = jnp.maximum(h2 + b2_ref[...], 0.0)

    h3 = jnp.dot(h2.astype(jnp.bfloat16), w3_ref[...],
                 preferred_element_type=jnp.float32)                       # (TB, z)
    h3 = jnp.maximum(h3 + b3_ref[...], 0.0)

    # Fused heads: one (TB, z) @ (z, 2z) matmul -> [mean | logvar].
    y = jnp.dot(h3.astype(jnp.bfloat16), wh_ref[...],
                preferred_element_type=jnp.float32) + bh_ref[...]          # (TB, 2z)

    z = y.shape[1] // 2
    # Lane-dense packed output: first z lanes = mean, last z lanes = exp(logvar).
    # iota mask instead of slice+concat (pure VPU/EUP, no cross-lane shuffle).
    col = jax.lax.broadcasted_iota(jnp.int32, y.shape, 1)
    out_ref[...] = jnp.where(col < z, y, jnp.exp(y))


def _resident_spec(shape):
    """Full-array block, same block every grid step -> stays VMEM-resident.

    Constant index_map means the block is never re-DMA'd, so request
    single-buffering (Buffered(1)) to save the redundant second VMEM buffer.
    """
    index_map = lambda i: (0,) * len(shape)
    if hasattr(pl, "Buffered"):
        try:
            return pl.BlockSpec(shape, index_map, pipeline_mode=pl.Buffered(1))
        except TypeError:
            pass
    return pl.BlockSpec(shape, index_map)


def prepare_encoder_params(params):
    """One-time preprocessing of the raw (PyTorch-layout) parameters.

    Hoisted out of encoder_forward so bf16 weight casts and the mean/logvar
    head fusion are not re-executed on every forward call.
    """
    return {
        "w1": params["w1"].astype(jnp.bfloat16),
        "b1": params["b1"].astype(jnp.float32),
        "w2": params["w2"].astype(jnp.bfloat16),
        "b2": params["b2"].astype(jnp.float32),
        "w3": params["w3"].astype(jnp.bfloat16),
        "b3": params["b3"].astype(jnp.float32),
        # Fuse mean / logvar heads into one (z, 2z) weight and (1, 2z) bias.
        "wh": jnp.concatenate([params["wm"], params["wv"]], axis=1).astype(jnp.bfloat16),
        "bh": jnp.concatenate([params["bm"], params["bv"]], axis=1).astype(jnp.float32),
        "z": int(params["wm"].shape[1]),
    }


def encoder_forward(x_nchw, prep, *, tb_max=2048):
    """Runs the Encoder forward pass.

    Args:
      x_nchw: (B, 1, 28, 28) float32 image batch (NCHW, like PyTorch).
      prep:   output of prepare_encoder_params(params).
      tb_max: batch-tile cap (2048 fits comfortably under the scoped-VMEM
              limits set below on v5e/v6e/v7x).

    Returns:
      (mean, scale): parameters of the Normal distribution, each (B, z) f32.
    """
    B = x_nchw.shape[0]
    z = prep["z"]
    feat = 28 * 28

    # Flatten only (metadata reshape) — x stays f32, cast happens in-kernel.
    x = x_nchw.reshape(B, feat)

    w1, b1 = prep["w1"], prep["b1"]
    w2, b2 = prep["w2"], prep["b2"]
    w3, b3 = prep["w3"], prep["b3"]
    wh, bh = prep["wh"], prep["bh"]

    # Batch tile:
    #   * B <= 8: single block equal to the full batch dim (no (8,.) issue).
    #   * else:   multiple of 8, sized so the grid has >= 2 steps (lets the
    #             "parallel" batch axis use both TensorCores on v7x), capped
    #             at tb_max.  The (possibly partial) tail block is handled by
    #             Pallas' masked stores — no jnp.pad round-trip on x.
    if B <= 8:
        TB = B
    else:
        half = -(-B // 2)                       # ceil(B / 2)
        TB = min(tb_max, ((half + 7) // 8) * 8)
    grid = (pl.cdiv(B, TB),)

    in_specs = [
        pl.BlockSpec((TB, feat), lambda i: (i, 0)),   # x batch tile (f32)
        _resident_spec(w1.shape), _resident_spec(b1.shape),
        _resident_spec(w2.shape), _resident_spec(b2.shape),
        _resident_spec(w3.shape), _resident_spec(b3.shape),
        _resident_spec(wh.shape), _resident_spec(bh.shape),
    ]
    out_specs = pl.BlockSpec((TB, 2 * z), lambda i: (i, 0))

    flops = 2 * B * (feat * 256 + 256 * 128 + 128 * z + z * 2 * z)
    bytes_accessed = (
        x.size * 4                                             # f32 x stream
        + (w1.size + w2.size + w3.size + wh.size) * 2          # bf16 weights
        + (b1.size + b2.size + b3.size + bh.size) * 4          # f32 biases
        + B * 2 * z * 4                                        # f32 packed out
    )
    cost = pl.CostEstimate(flops=flops,
                           transcendentals=B * 2 * z,          # exp on full slab
                           bytes_accessed=bytes_accessed)

    packed = pl.pallas_call(
        _encoder_kernel,
        out_shape=jax.ShapeDtypeStruct((B, 2 * z), jnp.float32),
        grid=grid,
        in_specs=in_specs,
        out_specs=out_specs,
        compiler_params=pltpu.CompilerParams(
            dimension_semantics=("parallel",),
            # TB=2048 f32 x is ~6.4 MB/block (double-buffered ~12.8 MB) plus
            # weights + intermediates: raise the scoped-VMEM limit above the
            # v5e 16 MiB default; 48 MiB stays under v7x's 64 MiB physical.
            vmem_limit_bytes=48 * 1024 * 1024,
        ),
        cost_estimate=cost,
    )(x, w1, b1, w2, b2, w3, b3, wh, bh)

    mean = packed[:, :z]
    scale = packed[:, z:]
    return mean, scale


def _linear_params(key, fan_in, fan_out):
    """PyTorch-style uniform(-1/sqrt(fan_in), 1/sqrt(fan_in)) init.

    Weights stored transposed: (fan_in, fan_out).  Biases are (1, fan_out) so
    they stay 2-D inside the kernel (broadcast over the batch axis).
    """
    kw, kb = jax.random.split(key)
    bound = 1.0 / jnp.sqrt(jnp.float32(fan_in))
    w = jax.random.uniform(kw, (fan_in, fan_out), jnp.float32, -bound, bound)
    b = jax.random.uniform(kb, (1, fan_out), jnp.float32, -bound, bound)
    return w, b


def init_encoder_params(key, z=32):
    k1, k2, k3, k4, k5 = jax.random.split(key, 5)
    w1, b1 = _linear_params(k1, 28 * 28, 256)
    w2, b2 = _linear_params(k2, 256, 128)
    w3, b3 = _linear_params(k3, 128, z)
    wm, bm = _linear_params(k4, z, z)
    wv, bv = _linear_params(k5, z, z)
    return {
        "w1": w1, "b1": b1,
        "w2": w2, "b2": b2,
        "w3": w3, "b3": b3,
        "wm": wm, "bm": bm,
        "wv": wv, "bv": bv,
    }


if __name__ == "__main__":
    key = jax.random.PRNGKey(0)
    k_params, k_input = jax.random.split(key)

    z = 32
    params = init_encoder_params(k_params, z=z)
    prep = prepare_encoder_params(params)   # one-time: bf16 casts + head fusion

    # Small MNIST-like batch: (batch=2, channels=1, 28, 28), NCHW like PyTorch.
    x = jax.random.uniform(k_input, (2, 1, 28, 28), jnp.float32)

    mean, scale = encoder_forward(x, prep)
    jax.block_until_ready((mean, scale))

    assert mean.shape == (2, z) and scale.shape == (2, z)
    assert bool(jnp.all(scale > 0))  # exp(logvar) must be positive
    assert bool(jnp.all(jnp.isfinite(mean))) and bool(jnp.all(jnp.isfinite(scale)))
    # TODO(synk): torch.distributions.Normal object itself is not representable;
    # we return its (mean, scale=exp(logvar)) parameters instead.
    print("KERNEL_OK")
</pallas_src>

<mosaic_0001>
module attributes {stable_mosaic.version = 11 : i64} {
  func.func @_encoder_kernel(%arg0: i32, %arg1: memref<2x784xf32, #tpu.memory_space<vmem>>, %arg2: memref<784x256xbf16, #tpu.memory_space<vmem>>, %arg3: memref<1x256xf32, #tpu.memory_space<vmem>>, %arg4: memref<256x128xbf16, #tpu.memory_space<vmem>>, %arg5: memref<1x128xf32, #tpu.memory_space<vmem>>, %arg6: memref<128x32xbf16, #tpu.memory_space<vmem>>, %arg7: memref<1x32xf32, #tpu.memory_space<vmem>>, %arg8: memref<32x64xbf16, #tpu.memory_space<vmem>>, %arg9: memref<1x64xf32, #tpu.memory_space<vmem>>, %arg10: memref<2x64xf32, #tpu.memory_space<vmem>>) attributes {dimension_semantics = [#tpu.dimension_semantics<parallel>], iteration_bounds = array<i64: 1>, scalar_prefetch = 0 : i64, scratch_operands = 0 : i64, tpu.core_type = #tpu.core_type<tc>, window_params = [{transform_indices = @transform_0, window_bounds = array<i64: 2, 784>}, {pipeline_mode = #tpu.pipeline_mode<synchronous>, transform_indices = @transform_1, window_bounds = array<i64: 784, 256>}, {pipeline_mode = #tpu.pipeline_mode<synchronous>, transform_indices = @transform_2, window_bounds = array<i64: 1, 256>}, {pipeline_mode = #tpu.pipeline_mode<synchronous>, transform_indices = @transform_3, window_bounds = array<i64: 256, 128>}, {pipeline_mode = #tpu.pipeline_mode<synchronous>, transform_indices = @transform_4, window_bounds = array<i64: 1, 128>}, {pipeline_mode = #tpu.pipeline_mode<synchronous>, transform_indices = @transform_5, window_bounds = array<i64: 128, 32>}, {pipeline_mode = #tpu.pipeline_mode<synchronous>, transform_indices = @transform_6, window_bounds = array<i64: 1, 32>}, {pipeline_mode = #tpu.pipeline_mode<synchronous>, transform_indices = @transform_7, window_bounds = array<i64: 32, 64>}, {pipeline_mode = #tpu.pipeline_mode<synchronous>, transform_indices = @transform_8, window_bounds = array<i64: 1, 64>}, {transform_indices = @transform_9, window_bounds = array<i64: 2, 64>}]} {
    %c0 = arith.constant 0 : index
    %c0_0 = arith.constant 0 : index
    %0 = vector.load %arg1[%c0, %c0_0] : memref<2x784xf32, #tpu.memory_space<vmem>>, vector<2x784xf32>
    %1 = arith.truncf %0 : vector<2x784xf32> to vector<2x784xbf16>
    %c0_1 = arith.constant 0 : index
    %c0_2 = arith.constant 0 : index
    %2 = vector.load %arg2[%c0_1, %c0_2] : memref<784x256xbf16, #tpu.memory_space<vmem>>, vector<784x256xbf16>
    %cst = arith.constant dense<0.000000e+00> : vector<2x256xf32>
    %3 = tpu.matmul %1, %2, %cst {dimension_numbers = #tpu.dot_dimension_numbers<[1], [0], [0], [1], [0, 0, 1, 1], [], []>} : vector<2x784xbf16>, vector<784x256xbf16>, vector<2x256xf32> -> vector<2x256xf32>
    %c0_3 = arith.constant 0 : index
    %c0_4 = arith.constant 0 : index
    %4 = vector.load %arg3[%c0_3, %c0_4] : memref<1x256xf32, #tpu.memory_space<vmem>>, vector<1x256xf32>
    %5 = vector.broadcast %4 : vector<1x256xf32> to vector<2x256xf32>
    %6 = arith.addf %3, %5 : vector<2x256xf32>
    %cst_5 = arith.constant 0.000000e+00 : f32
    %7 = vector.broadcast %cst_5 : f32 to vector<2x256xf32>
    %8 = arith.maximumf %6, %7 : vector<2x256xf32>
    %9 = arith.truncf %8 : vector<2x256xf32> to vector<2x256xbf16>
    %c0_6 = arith.constant 0 : index
    %c0_7 = arith.constant 0 : index
    %10 = vector.load %arg4[%c0_6, %c0_7] : memref<256x128xbf16, #tpu.memory_space<vmem>>, vector<256x128xbf16>
    %cst_8 = arith.constant dense<0.000000e+00> : vector<2x128xf32>
    %11 = tpu.matmul %9, %10, %cst_8 {dimension_numbers = #tpu.dot_dimension_numbers<[1], [0], [0], [1], [0, 0, 1, 1], [], []>} : vector<2x256xbf16>, vector<256x128xbf16>, vector<2x128xf32> -> vector<2x128xf32>
    %c0_9 = arith.constant 0 : index
    %c0_10 = arith.constant 0 : index
    %12 = vector.load %arg5[%c0_9, %c0_10] : memref<1x128xf32, #tpu.memory_space<vmem>>, vector<1x128xf32>
    %13 = vector.broadcast %12 : vector<1x128xf32> to vector<2x128xf32>
    %14 = arith.addf %11, %13 : vector<2x128xf32>
    %cst_11 = arith.constant 0.000000e+00 : f32
    %15 = vector.broadcast %cst_11 : f32 to vector<2x128xf32>
    %16 = arith.maximumf %14, %15 : vector<2x128xf32>
    %17 = arith.truncf %16 : vector<2x128xf32> to vector<2x128xbf16>
    %c0_12 = arith.constant 0 : index
    %c0_13 = arith.constant 0 : index
    %18 = vector.load %arg6[%c0_12, %c0_13] : memref<128x32xbf16, #tpu.memory_space<vmem>>, vector<128x32xbf16>
    %cst_14 = arith.constant dense<0.000000e+00> : vector<2x32xf32>
    %19 = tpu.matmul %17, %18, %cst_14 {dimension_numbers = #tpu.dot_dimension_numbers<[1], [0], [0], [1], [0, 0, 1, 1], [], []>} : vector<2x128xbf16>, vector<128x32xbf16>, vector<2x32xf32> -> vector<2x32xf32>
    %c0_15 = arith.constant 0 : index
    %c0_16 = arith.constant 0 : index
    %20 = vector.load %arg7[%c0_15, %c0_16] : memref<1x32xf32, #tpu.memory_space<vmem>>, vector<1x32xf32>
    %21 = vector.broadcast %20 : vector<1x32xf32> to vector<2x32xf32>
    %22 = arith.addf %19, %21 : vector<2x32xf32>
    %cst_17 = arith.constant 0.000000e+00 : f32
    %23 = vector.broadcast %cst_17 : f32 to vector<2x32xf32>
    %24 = arith.maximumf %22, %23 : vector<2x32xf32>
    %25 = arith.truncf %24 : vector<2x32xf32> to vector<2x32xbf16>
    %c0_18 = arith.constant 0 : index
    %c0_19 = arith.constant 0 : index
    %26 = vector.load %arg8[%c0_18, %c0_19] : memref<32x64xbf16, #tpu.memory_space<vmem>>, vector<32x64xbf16>
    %cst_20 = arith.constant dense<0.000000e+00> : vector<2x64xf32>
    %27 = tpu.matmul %25, %26, %cst_20 {dimension_numbers = #tpu.dot_dimension_numbers<[1], [0], [0], [1], [0, 0, 1, 1], [], []>} : vector<2x32xbf16>, vector<32x64xbf16>, vector<2x64xf32> -> vector<2x64xf32>
    %c0_21 = arith.constant 0 : index
    %c0_22 = arith.constant 0 : index
    %28 = vector.load %arg9[%c0_21, %c0_22] : memref<1x64xf32, #tpu.memory_space<vmem>>, vector<1x64xf32>
    %29 = vector.broadcast %28 : vector<1x64xf32> to vector<2x64xf32>
    %30 = arith.addf %27, %29 : vector<2x64xf32>
    %31 = tpu.iota {dimensions = array<i32: 1>} : vector<2x64xi32>
    %c32_i32 = arith.constant 32 : i32
    %32 = vector.broadcast %c32_i32 : i32 to vector<2x64xi32>
    %33 = arith.cmpi slt, %31, %32 : vector<2x64xi32>
    %34 = math.exp %30 : vector<2x64xf32>
    %35 = arith.select %33, %30, %34 : vector<2x64xi1>, vector<2x64xf32>
    %c0_23 = arith.constant 0 : index
    %c0_24 = arith.constant 0 : index
    %36 = vector.load %arg10[%c0_23, %c0_24] : memref<2x64xf32, #tpu.memory_space<vmem>>, vector<2x64xf32>
    tpu.vector_store %arg10[%c0_23, %c0_24], %35 {strides = array<i32>} : memref<2x64xf32, #tpu.memory_space<vmem>>, vector<2x64xf32>,
    return
  }
  func.func @transform_0(%arg0: i32) -> (i32, i32) {
    %c0_i32 = arith.constant 0 : i32
    %c0_i32_0 = arith.constant 0 : i32
    return %arg0, %c0_i32 : i32, i32
  }
  func.func @transform_1(%arg0: i32) -> (i32, i32) {
    %c0_i32 = arith.constant 0 : i32
    %c0_i32_0 = arith.constant 0 : i32
    %c0_i32_1 = arith.constant 0 : i32
    return %c0_i32, %c0_i32_0 : i32, i32
  }
  func.func @transform_2(%arg0: i32) -> (i32, i32) {
    %c0_i32 = arith.constant 0 : i32
    %c0_i32_0 = arith.constant 0 : i32
    %c0_i32_1 = arith.constant 0 : i32
    return %c0_i32, %c0_i32_0 : i32, i32
  }
  func.func @transform_3(%arg0: i32) -> (i32, i32) {
    %c0_i32 = arith.constant 0 : i32
    %c0_i32_0 = arith.constant 0 : i32
    %c0_i32_1 = arith.constant 0 : i32
    return %c0_i32, %c0_i32_0 : i32, i32
  }
  func.func @transform_4(%arg0: i32) -> (i32, i32) {
    %c0_i32 = arith.constant 0 : i32
    %c0_i32_0 = arith.constant 0 : i32
    %c0_i32_1 = arith.constant 0 : i32
    return %c0_i32, %c0_i32_0 : i32, i32
  }
  func.func @transform_5(%arg0: i32) -> (i32, i32) {
    %c0_i32 = arith.constant 0 : i32
    %c0_i32_0 = arith.constant 0 : i32
    %c0_i32_1 = arith.constant 0 : i32
    return %c0_i32, %c0_i32_0 : i32, i32
  }
  func.func @transform_6(%arg0: i32) -> (i32, i32) {
    %c0_i32 = arith.constant 0 : i32
    %c0_i32_0 = arith.constant 0 : i32
    %c0_i32_1 = arith.constant 0 : i32
    return %c0_i32, %c0_i32_0 : i32, i32
  }
  func.func @transform_7(%arg0: i32) -> (i32, i32) {
    %c0_i32 = arith.constant 0 : i32
    %c0_i32_0 = arith.constant 0 : i32
    %c0_i32_1 = arith.constant 0 : i32
    return %c0_i32, %c0_i32_0 : i32, i32
  }
  func.func @transform_8(%arg0: i32) -> (i32, i32) {
    %c0_i32 = arith.constant 0 : i32
    %c0_i32_0 = arith.constant 0 : i32
    %c0_i32_1 = arith.constant 0 : i32
    return %c0_i32, %c0_i32_0 : i32, i32
  }
  func.func @transform_9(%arg0: i32) -> (i32, i32) {
    %c0_i32 = arith.constant 0 : i32
    %c0_i32_0 = arith.constant 0 : i32
    return %arg0, %c0_i32 : i32, i32
  }
}

</mosaic_0001>

<bundles_post_ra>
// kernel: tpu_custom_call.1
= control target key start
LH: loop header
LB: loop body
LE: loop exit
PB: predicated region body
PF: predicated region fallthrough
CT: control target
= control target key end

     0   :  { %14 = vsyncpa [#allocation3], 0  ;;  %s2041_s0 = inlined_call_operand.vmem [shape: f32[2,784], index: 0, kind: input, shape index: {}]   ;;  %s2042_s1 = inlined_call_operand.hbm [shape: bf16[784,256], index: 1, kind: input, shape index: {}]   ;;  %s2043_s2 = inlined_call_operand.vmem [shape: f32[1,256], index: 2, kind: input, shape index: {}]   ;;  %s2044_s3 = inlined_call_operand.hbm [shape: bf16[256,128], index: 3, kind: input, shape index: {}]   ;;  %s2045_s4 = inlined_call_operand.vmem [shape: f32[1,128], index: 4, kind: input, shape index: {}]   ;;  %s2046_s5 = inlined_call_operand.vmem [shape: bf16[128,32], index: 5, kind: input, shape index: {}]   ;;  %s2047_s6 = inlined_call_operand.vmem [shape: f32[1,32], index: 6, kind: input, shape index: {}]   ;;  %s2048_s7 = inlined_call_operand.vmem [shape: bf16[32,64], index: 7, kind: input, shape index: {}]   ;;  %s2049_s8 = inlined_call_operand.vmem [shape: f32[1,64], index: 8, kind: input, shape index: {}]   ;;  %s2050_s9 = inlined_call_operand.hbm [shape: f32[2,64], index: 9, kind: output, shape index: {}]  }
   0x1   :  { %15 = vsyncpa [#allocation6], 0 }
   0x2   :  { %16 = vsyncpa [#allocation4], 0  ;;  %s23_s11 = sshll.u32 %s2042_s1, 4  ;;  %s1897_s12 = smov [#allocation2]   ;;  %s24_s11 = int_to_ptr.hbm [resolvable:$true] %s23_s11 }
   0x3   :  { %s25_s13 = sshll.u32 %s1897_s12, 4  ;;  %s38_s16 = sshll.u32 %s2044_s3, 4  ;;  %s26_s13 = int_to_ptr.vmem [resolvable:$true] %s25_s13  ;;  %s39_s16 = int_to_ptr.hbm [resolvable:$true] %s38_s16 }
   0x4   :  { %s1898_s17 = smov 128   ;;  %s1899_s18 = smov 8  }
   0x5   :  { %31 = dma.hbm_to_vmem [thread:$0]  %s24_s11, 12544, %s26_s13, [#allocation3], %s1898_s17, %s1898_s17, %s1899_s18  }
   0x6   :  { %s1900_s19 = smov [#allocation5]   ;;  %s1901_s21 = smov 64  }
   0x7   :  { %s40_s20 = sshll.u32 %s1900_s19, 4  ;;  %s1902_s22 = smov 4   ;;  %s41_s20 = int_to_ptr.vmem [resolvable:$true] %s40_s20 }
   0x8   :  { %46 = dma.hbm_to_vmem [thread:$0]  %s39_s16, 2048, %s41_s20, [#allocation6], %s1901_s21, %s1901_s21, %s1902_s22  }
   0x9   :  { %1891 = dma.done.wait [#allocation3], 12544  }
   0xa   :  { %1892 = vsyncadd [#allocation3], 4294954752 }
   0xb   :  { %1893 = dma.done.wait [#allocation6], 2048  }
   0xc   :  { %1894 = vsyncadd [#allocation6], 4294965248  ;;  %v1242_v0 = vld [vmem:[#allocation2 + $0x70] sm:$0xf]  ;;  %v1698_v1 = vld [vmem:[#allocation2 + $0x74] sm:$0xf0] }
   0xd   :  { %v1370_v2 = vld [vmem:[#allocation2 + $0x170] sm:$0xf]  ;;  %v1243_v3 = vor.u32 %v1698_v1, %v1242_v0  ;;  %v1730_v4 = vld [vmem:[#allocation2 + $0x174] sm:$0xf0]  ;;  %v1234_v11 = vld [vmem:[#allocation2 + $0x60] sm:$0xf] }
   0xe   :  { %v1434_v5 = vld [vmem:[#allocation2 + $0x1f0] sm:$0xf]  ;;  %v1746_v6 = vld [vmem:[#allocation2 + $0x1f4] sm:$0xf0]  ;;  %v1371_v7 = vor.u32 %v1730_v4, %v1370_v2  ;;  %v1696_v13 = vld [vmem:[#allocation2 + $0x64] sm:$0xf0] }
   0xf   :  { %v1435_v8 = vor.u32 %v1746_v6, %v1434_v5  ;;  %v1306_v9 = vld [vmem:[#allocation2 + $0xf0] sm:$0xf]  ;;  %v1714_v10 = vld [vmem:[#allocation2 + $0xf4] sm:$0xf0]  ;;  %692 = vmatpush.bf16.msra.mxu0 %v1243_v3  ;;  %v1362_v14 = vld [vmem:[#allocation2 + $0x160] sm:$0xf]  ;;  %v1235_v16 = vor.u32 %v1696_v13, %v1234_v11 }
  0x10   :  { %v1307_v12 = vor.u32 %v1714_v10, %v1306_v9  ;;  %v1728_v15 = vld [vmem:[#allocation2 + $0x164] sm:$0xf0]  ;;  %718 = vmatpush.bf16.msra.mxu2 %v1371_v7  ;;  %v1426_v18 = vld [vmem:[#allocation2 + $0x1e0] sm:$0xf]  ;;  %v1226_v23 = vld [vmem:[#allocation2 + $0x50] sm:$0xf] }
  0x11   :  { %731 = vmatpush.bf16.msra.mxu3 %v1435_v8  ;;  %v1363_v17 = vor.u32 %v1728_v15, %v1362_v14  ;;  %v1744_v19 = vld [vmem:[#allocation2 + $0x1e4] sm:$0xf0]  ;;  %v1298_v20 = vld [vmem:[#allocation2 + $0xe0] sm:$0xf]  ;;  %v1694_v24 = vld [vmem:[#allocation2 + $0x54] sm:$0xf0] }
  0x12   :  { %705 = vmatpush.bf16.msra.mxu1 %v1307_v12  ;;  %v1427_v21 = vor.u32 %v1744_v19, %v1426_v18  ;;  %v1712_v22 = vld [vmem:[#allocation2 + $0xe4] sm:$0xf0]  ;;  %v1354_v26 = vld [vmem:[#allocation2 + $0x150] sm:$0xf]  ;;  %v1726_v27 = vld [vmem:[#allocation2 + $0x154] sm:$0xf0]  ;;  %v1227_v29 = vor.u32 %v1694_v24, %v1226_v23 }
  0x13   :  { %v1299_v25 = vor.u32 %v1712_v22, %v1298_v20  ;;  %v1418_v28 = vld [vmem:[#allocation2 + $0x1d0] sm:$0xf]  ;;  %693 = vmatpush.bf16.msra.mxu0 %v1235_v16  ;;  %v1742_v30 = vld [vmem:[#allocation2 + $0x1d4] sm:$0xf0]  ;;  %v1355_v33 = vor.u32 %v1726_v27, %v1354_v26  ;;  %v1218_v35 = vld [vmem:[#allocation2 + $0x40] sm:$0xf] }
  0x14   :  { %v1290_v31 = vld [vmem:[#allocation2 + $0xd0] sm:$0xf]  ;;  %v1710_v32 = vld [vmem:[#allocation2 + $0xd4] sm:$0xf0]  ;;  %719 = vmatpush.bf16.msra.mxu2 %v1363_v17  ;;  %v1419_v34 = vor.u32 %v1742_v30, %v1418_v28  ;;  %v1692_v36 = vld [vmem:[#allocation2 + $0x44] sm:$0xf0] }
  0x15   :  { %732 = vmatpush.bf16.msra.mxu3 %v1427_v21  ;;  %v1346_v37 = vld [vmem:[#allocation2 + $0x140] sm:$0xf]  ;;  %v1291_v38 = vor.u32 %v1710_v32, %v1290_v31  ;;  %v1724_v39 = vld [vmem:[#allocation2 + $0x144] sm:$0xf0]  ;;  %v1219_v44 = vor.u32 %v1692_v36, %v1218_v35  ;;  %v1210_v47 = vld [vmem:[#allocation2 + $0x30] sm:$0xf] }
  0x16   :  { %706 = vmatpush.bf16.msra.mxu1 %v1299_v25  ;;  %v1410_v40 = vld [vmem:[#allocation2 + $0x1c0] sm:$0xf]  ;;  %v1740_v41 = vld [vmem:[#allocation2 + $0x1c4] sm:$0xf0]  ;;  %v1347_v45 = vor.u32 %v1724_v39, %v1346_v37  ;;  %v1690_v48 = vld [vmem:[#allocation2 + $0x34] sm:$0xf0] }
  0x17   :  { %v1282_v42 = vld [vmem:[#allocation2 + $0xc0] sm:$0xf]  ;;  %v1708_v43 = vld [vmem:[#allocation2 + $0xc4] sm:$0xf0]  ;;  %694 = vmatpush.bf16.msra.mxu0 %v1227_v29  ;;  %v1411_v46 = vor.u32 %v1740_v41, %v1410_v40  ;;  %v1338_v49 = vld [vmem:[#allocation2 + $0x130] sm:$0xf]  ;;  %v1211_v56 = vor.u32 %v1690_v48, %v1210_v47 }
  0x18   :  { %720 = vmatpush.bf16.msra.mxu2 %v1355_v33  ;;  %v1283_v50 = vor.u32 %v1708_v43, %v1282_v42  ;;  %v1722_v51 = vld [vmem:[#allocation2 + $0x134] sm:$0xf0]  ;;  %v1402_v52 = vld [vmem:[#allocation2 + $0x1b0] sm:$0xf]  ;;  %v1202_v59 = vld [vmem:[#allocation2 + $0x20] sm:$0xf] }
  0x19   :  { %733 = vmatpush.bf16.msra.mxu3 %v1419_v34  ;;  %v1738_v53 = vld [vmem:[#allocation2 + $0x1b4] sm:$0xf0]  ;;  %v1274_v54 = vld [vmem:[#allocation2 + $0xb0] sm:$0xf]  ;;  %v1339_v57 = vor.u32 %v1722_v51, %v1338_v49  ;;  %v1688_v60 = vld [vmem:[#allocation2 + $0x24] sm:$0xf0] }
  0x1a   :  { %707 = vmatpush.bf16.msra.mxu1 %v1291_v38  ;;  %v1706_v55 = vld [vmem:[#allocation2 + $0xb4] sm:$0xf0]  ;;  %v1403_v58 = vor.u32 %v1738_v53, %v1402_v52  ;;  %v1330_v61 = vld [vmem:[#allocation2 + $0x120] sm:$0xf]  ;;  %v1720_v63 = vld [vmem:[#allocation2 + $0x124] sm:$0xf0]  ;;  %v1203_v4 = vor.u32 %v1688_v60, %v1202_v59 }
  0x1b   :  { %695 = vmatpush.bf16.msra.mxu0 %v1219_v44  ;;  %v1275_v62 = vor.u32 %v1706_v55, %v1274_v54  ;;  %v1394_v0 = vld [vmem:[#allocation2 + $0x1a0] sm:$0xf]  ;;  %v1736_v1 = vld [vmem:[#allocation2 + $0x1a4] sm:$0xf0]  ;;  %v1194_v5 = vld [vmem:[#allocation2 + $0x10] sm:$0xf]  ;;  %v1331_v7 = vor.u32 %v1720_v63, %v1330_v61 }
  0x1c   :  { %721 = vmatpush.bf16.msra.mxu2 %v1347_v45  ;;  %v1266_v2 = vld [vmem:[#allocation2 + $0xa0] sm:$0xf]  ;;  %v1704_v3 = vld [vmem:[#allocation2 + $0xa4] sm:$0xf0]  ;;  %v1686_v6 = vld [vmem:[#allocation2 + $0x14] sm:$0xf0]  ;;  %v1395_v8 = vor.u32 %v1736_v1, %v1394_v0 }
  0x1d   :  { %734 = vmatpush.bf16.msra.mxu3 %v1411_v46  ;;  %v1322_v9 = vld [vmem:[#allocation2 + $0x110] sm:$0xf]  ;;  %v1718_v10 = vld [vmem:[#allocation2 + $0x114] sm:$0xf0]  ;;  %v1267_v12 = vor.u32 %v1704_v3, %v1266_v2  ;;  %v1186_v16 = vld [vmem:[#allocation2] sm:$0xf]  ;;  %v1195_v19 = vor.u32 %v1686_v6, %v1194_v5 }
  0x1e   :  { %708 = vmatpush.bf16.msra.mxu1 %v1283_v50  ;;  %v1386_v11 = vld [vmem:[#allocation2 + $0x190] sm:$0xf]  ;;  %v1734_v13 = vld [vmem:[#allocation2 + $0x194] sm:$0xf0]  ;;  %v1684_v17 = vld [vmem:[#allocation2 + $0x4] sm:$0xf0]  ;;  %v1323_v22 = vor.u32 %v1718_v10, %v1322_v9 }
  0x1f   :  { %696 = vmatpush.bf16.msra.mxu0 %v1211_v56  ;;  %v1258_v14 = vld [vmem:[#allocation2 + $0x90] sm:$0xf]  ;;  %v1702_v15 = vld [vmem:[#allocation2 + $0x94] sm:$0xf0]  ;;  %v1314_v20 = vld [vmem:[#allocation2 + $0x100] sm:$0xf]  ;;  %v1387_v23 = vor.u32 %v1734_v13, %v1386_v11  ;;  %v1187_v34 = vor.u32 %v1684_v17, %v1186_v16 }
  0x20   :  { %722 = vmatpush.bf16.msra.mxu2 %v1339_v57  ;;  %v66_v18 = vld [vmem:[%s2041_s0] sm:$0xff]  ;;  %v1716_v21 = vld [vmem:[#allocation2 + $0x104] sm:$0xf0]  ;;  %v1378_v24 = vld [vmem:[#allocation2 + $0x180] sm:$0xf]  ;;  %v1259_v27 = vor.u32 %v1702_v15, %v1258_v14  ;;  %vm688_vm0 = vcmask 130048  }
  0x21   :  { %735 = vmatpush.bf16.msra.mxu3 %v1403_v58  ;;  %70 = vst [vmem:[#allocation1] ss:$4 sm:$0xff] %v66_v18  ;;  %v1732_v25 = vld [vmem:[#allocation2 + $0x184] sm:$0xf0]  ;;  %v1498_v26 = vld [vmem:[#allocation2 + $0x270] sm:$0xf]  ;;  %v1315_v38 = vor.u32 %v1716_v21, %v1314_v20 }
  0x22   :  { %709 = vmatpush.bf16.msra.mxu1 %v1275_v62  ;;  %v1762_v28 = vld [vmem:[#allocation2 + $0x274] sm:$0xf0]  ;;  %v1697_v29 = vld [vmem:[#allocation2 + $0x74] sm:$0xf]  ;;  %v1244_v30 = vld [vmem:[#allocation2 + $0x78] sm:$0xf0]  ;;  %v1379_v39 = vor.u32 %v1732_v25, %v1378_v24 }
  0x23   :  { %697 = vmatpush.bf16.msra.mxu0 %v1203_v4  ;;  %v1250_v31 = vld [vmem:[#allocation2 + $0x80] sm:$0xf]  ;;  %v1700_v32 = vld [vmem:[#allocation2 + $0x84] sm:$0xf0]  ;;  %v1562_v33 = vld [vmem:[#allocation2 + $0x2f0] sm:$0xf]  ;;  %v1499_v43 = vor.u32 %v1762_v28, %v1498_v26  ;;  %v1247_v44 = vor.u32 %v1697_v29, %v1244_v30 }
  0x24   :  { %723 = vmatpush.bf16.msra.mxu2 %v1331_v7  ;;  %v1778_v35 = vld [vmem:[#allocation2 + $0x2f4] sm:$0xf0]  ;;  %v1570_v36 = vld [vmem:[#allocation2 + $0x300] sm:$0xf]  ;;  %v1780_v37 = vld [vmem:[#allocation2 + $0x304] sm:$0xf0]  ;;  %v1251_v48 = vor.u32 %v1700_v32, %v1250_v31 }
  0x25   :  { %736 = vmatpush.bf16.msra.mxu3 %v1395_v8  ;;  %v1713_v40 = vld [vmem:[#allocation2 + $0xf4] sm:$0xf]  ;;  %v1308_v41 = vld [vmem:[#allocation2 + $0xf8] sm:$0xf0]  ;;  %v1490_v42 = vld [vmem:[#allocation2 + $0x260] sm:$0xf]  ;;  %v1571_v50 = vor.u32 %v1780_v37, %v1570_v36  ;;  %v1563_v53 = vor.u32 %v1778_v35, %v1562_v33 }
  0x26   :  { %710 = vmatpush.bf16.msra.mxu1 %v1267_v12  ;;  %v1760_v45 = vld [vmem:[#allocation2 + $0x264] sm:$0xf0]  ;;  %v1695_v46 = vld [vmem:[#allocation2 + $0x64] sm:$0xf]  ;;  %v1236_v47 = vld [vmem:[#allocation2 + $0x68] sm:$0xf0]  ;;  %v1311_v56 = vor.u32 %v1713_v40, %v1308_v41 }
  0x27   :  { %698 = vmatpush.bf16.msra.mxu0 %v1195_v19  ;;  %v1554_v54 = vld [vmem:[#allocation2 + $0x2e0] sm:$0xf]  ;;  %v1776_v57 = vld [vmem:[#allocation2 + $0x2e4] sm:$0xf0]  ;;  %v1491_v60 = vor.u32 %v1760_v45, %v1490_v42  ;;  %v1239_v61 = vor.u32 %v1695_v46, %v1236_v47  ;;  %v1711_v62 = vld [vmem:[#allocation2 + $0xe4] sm:$0xf] }
  0x28   :  { %724 = vmatpush.bf16.msra.mxu2 %v1323_v22  ;;  %v75_v49 = vld.sshfl [vmem:[#allocation1 + $0x10] sm:$0xff pattern:$0x73625140]  ;;  %v73_v51 = vld.sshfl [vmem:[#allocation1] sm:$0xff pattern:$0x73625140]  ;;  %v1555_v6 = vor.u32 %v1776_v57, %v1554_v54 }
  0x29   :  { %737 = vmatpush.bf16.msra.mxu3 %v1387_v23  ;;  %v1963_v52 = vpack.c.bf16 %v75_v49, %v75_v49  ;;  %v76_v55 = vld.sshfl [vmem:[#allocation1 + $0x18] sm:$0xff pattern:$0x73625140]  ;;  %v1965_v58 = vpack.c.bf16 %v73_v51, %v73_v51  ;;  %v74_v59 = vld.sshfl [vmem:[#allocation1 + $0x8] sm:$0xff pattern:$0x73625140] }
  0x2a   :  { %711 = vmatpush.bf16.msra.mxu1 %v1259_v27  ;;  %v1300_v63 = vld [vmem:[#allocation2 + $0xe8] sm:$0xf0]  ;;  %v1482_v0 = vld [vmem:[#allocation2 + $0x250] sm:$0xf]  ;;  %v1758_v1 = vld [vmem:[#allocation2 + $0x254] sm:$0xf0]  ;;  %v1967_v4 = vpack.c.bf16 %v76_v55, %v76_v55  ;;  %v1969_v5 = vpack.c.bf16 %v74_v59, %v74_v59 }
  0x2b   :  { %699 = vmatpush.bf16.msra.mxu0 %v1187_v34  ;;  %v1693_v2 = vld [vmem:[#allocation2 + $0x54] sm:$0xf]  ;;  %v1228_v3 = vld [vmem:[#allocation2 + $0x58] sm:$0xf0]  ;;  %v1303_v7 = vor.u32 %v1711_v62, %v1300_v63  ;;  %v1546_v8 = vld [vmem:[#allocation2 + $0x2d0] sm:$0xf]  ;;  %v1483_v10 = vor.u32 %v1758_v1, %v1482_v0 }
  0x2c   :  { %725 = vmatpush.bf16.msra.mxu2 %v1315_v38  ;;  %v1774_v9 = vld [vmem:[#allocation2 + $0x2d4] sm:$0xf0]  ;;  %v1231_v11 = vor.u32 %v1693_v2, %v1228_v3  ;;  %v1709_v12 = vld [vmem:[#allocation2 + $0xd4] sm:$0xf]  ;;  %v1292_v13 = vld [vmem:[#allocation2 + $0xd8] sm:$0xf0] }
  0x2d   :  { %738 = vmatpush.bf16.msra.mxu3 %v1379_v39  ;;  %v1474_v14 = vld [vmem:[#allocation2 + $0x240] sm:$0xf]  ;;  %v1756_v15 = vld [vmem:[#allocation2 + $0x244] sm:$0xf0]  ;;  %v1691_v16 = vld [vmem:[#allocation2 + $0x44] sm:$0xf]  ;;  %v1547_v18 = vor.u32 %v1774_v9, %v1546_v8  ;;  %v1295_v19 = vor.u32 %v1709_v12, %v1292_v13 }
  0x2e   :  { %712 = vmatpush.bf16.msra.mxu1 %v1251_v48  ;;  %700 = vmatmul.bf16.vlgmr.msra.gmra.mxu0 %v1965_v58  ;;  %v1220_v17 = vld [vmem:[#allocation2 + $0x48] sm:$0xf0]  ;;  %v1538_v20 = vld [vmem:[#allocation2 + $0x2c0] sm:$0xf]  ;;  %v1772_v21 = vld [vmem:[#allocation2 + $0x2c4] sm:$0xf0]  ;;  %v1475_v22 = vor.u32 %v1756_v15, %v1474_v14 }
  0x2f   :  { %744 = vmatpush.bf16.msrb.mxu0 %v1499_v43  ;;  %726 = vmatmul.bf16.vlgmr.msra.gmra.mxu2 %v1963_v52  ;;  %v1223_v23 = vor.u32 %v1691_v16, %v1220_v17  ;;  %v1707_v24 = vld [vmem:[#allocation2 + $0xc4] sm:$0xf]  ;;  %v1284_v25 = vld [vmem:[#allocation2 + $0xc8] sm:$0xf0]  ;;  %v1466_v26 = vld [vmem:[#allocation2 + $0x230] sm:$0xf]  ;;  %v1539_v30 = vor.u32 %v1772_v21, %v1538_v20 }
  0x30   :  { %777 = vmatpush.bf16.msrb.mxu2 %v1571_v50  ;;  %739 = vmatmul.bf16.vlgmr.msra.gmra.mxu3 %v1967_v4  ;;  %v1754_v27 = vld [vmem:[#allocation2 + $0x234] sm:$0xf0]  ;;  %v1689_v28 = vld [vmem:[#allocation2 + $0x34] sm:$0xf]  ;;  %v1212_v29 = vld [vmem:[#allocation2 + $0x38] sm:$0xf0]  ;;  %v1287_v32 = vor.u32 %v1707_v24, %v1284_v25 }
  0x31   :  { %783 = vmatpush.bf16.msrb.mxu3 %v1247_v44  ;;  %713 = vmatmul.bf16.vlgmr.msra.gmra.mxu1 %v1969_v5  ;;  %v1530_v31 = vld [vmem:[#allocation2 + $0x2b0] sm:$0xf]  ;;  %v1770_v33 = vld [vmem:[#allocation2 + $0x2b4] sm:$0xf0]  ;;  %v1705_v34 = vld [vmem:[#allocation2 + $0xb4] sm:$0xf]  ;;  %v1467_v36 = vor.u32 %v1754_v27, %v1466_v26  ;;  %v1215_v37 = vor.u32 %v1689_v28, %v1212_v29 }
  0x32   :  { %757 = vmatpush.bf16.msrb.mxu1 %v1563_v53  ;;  %v67_v35 = vld [vmem:[%s2041_s0 + $0x8] sm:$0x3f]  ;;  %v1276_v38 = vld [vmem:[#allocation2 + $0xb8] sm:$0xf0]  ;;  %v1752_v40 = vld [vmem:[#allocation2 + $0x224] sm:$0xf0]  ;;  %v1531_v43 = vor.u32 %v1770_v33, %v1530_v31 }
  0x33   :  { %745 = vmatpush.bf16.msrb.mxu0 %v1491_v60  ;;  %v1458_v39 = vld [vmem:[#allocation2 + $0x220] sm:$0xf]  ;;  %72 = vst [vmem:[#allocation1 + $0x20] ss:$4 sm:$0xff] %v67_v35  ;;  %v1687_v41 = vld [vmem:[#allocation2 + $0x24] sm:$0xf]  ;;  %v1279_v44 = vor.u32 %v1705_v34, %v1276_v38 }
  0x34   :  { %796 = vmatpush.bf16.msra.mxu2 %v1311_v56  ;;  %v1204_v42 = vld [vmem:[#allocation2 + $0x28] sm:$0xf0]  ;;  %v1522_v45 = vld [vmem:[#allocation2 + $0x2a0] sm:$0xf]  ;;  %v1768_v46 = vld [vmem:[#allocation2 + $0x2a4] sm:$0xf0]  ;;  %v1459_v48 = vor.u32 %v1752_v40, %v1458_v39 }
  0x35   :  { %784 = vmatpush.bf16.msrb.mxu3 %v1239_v61  ;;  %v1703_v47 = vld [vmem:[#allocation2 + $0xa4] sm:$0xf]  ;;  %v1207_v49 = vor.u32 %v1687_v41, %v1204_v42  ;;  %v1268_v50 = vld [vmem:[#allocation2 + $0xa8] sm:$0xf0]  ;;  %v1450_v51 = vld [vmem:[#allocation2 + $0x210] sm:$0xf]  ;;  %v1523_v57 = vor.u32 %v1768_v46, %v1522_v45 }
  0x36   :  { %758 = vmatpush.bf16.msrb.mxu1 %v1555_v6  ;;  %v1750_v53 = vld [vmem:[#allocation2 + $0x214] sm:$0xf0]  ;;  %v1685_v54 = vld [vmem:[#allocation2 + $0x14] sm:$0xf]  ;;  %v1196_v55 = vld [vmem:[#allocation2 + $0x18] sm:$0xf0]  ;;  %v1271_v62 = vor.u32 %v1703_v47, %v1268_v50 }
  0x37   :  { %746 = vmatpush.bf16.msrb.mxu0 %v1483_v10  ;;  %v1514_v56 = vld [vmem:[#allocation2 + $0x290] sm:$0xf]  ;;  %v1766_v59 = vld [vmem:[#allocation2 + $0x294] sm:$0xf0]  ;;  %v1701_v60 = vld [vmem:[#allocation2 + $0x94] sm:$0xf]  ;;  %v1451_v1 = vor.u32 %v1750_v53, %v1450_v51  ;;  %v1199_v2 = vor.u32 %v1685_v54, %v1196_v55 }
  0x38   :  { %797 = vmatpush.bf16.msra.mxu2 %v1303_v7  ;;  %v1260_v61 = vld [vmem:[#allocation2 + $0x98] sm:$0xf0]  ;;  %v1442_v63 = vld [vmem:[#allocation2 + $0x200] sm:$0xf]  ;;  %v1748_v3 = vld [vmem:[#allocation2 + $0x204] sm:$0xf0]  ;;  %v1515_v12 = vor.u32 %v1766_v59, %v1514_v56 }
  0x39   :  { %785 = vmatpush.bf16.msrb.mxu3 %v1231_v11  ;;  %v1683_v7 = vld [vmem:[#allocation2 + $0x4] sm:$0xf]  ;;  %v1188_v8 = vld [vmem:[#allocation2 + $0x8] sm:$0xf0]  ;;  %v1729_v9 = vld [vmem:[#allocation2 + $0x174] sm:$0xf]  ;;  %v1263_v16 = vor.u32 %v1701_v60, %v1260_v61  ;;  %v1443_v20 = vor.u32 %v1748_v3, %v1442_v63 }
  0x3a   :  { %759 = vmatpush.bf16.msrb.mxu1 %v1547_v18  ;;  %v79_v0 = vld.sshfl [vmem:[#allocation1 + $0x30] sm:$0xff pattern:$0x73625140]  ;;  %v1372_v10 = vld [vmem:[#allocation2 + $0x178] sm:$0xf0]  ;;  %v1191_v21 = vor.u32 %v1683_v7, %v1188_v8  ;;  %vm1141_vm1 = vcmask 261120  }
  0x3b   :  { %747 = vmatpush.bf16.msrb.mxu0 %v1475_v22  ;;  %v1978_v6 = vpack.c.bf16 %v79_v0, %v79_v0  ;;  %v1761_v11 = vld [vmem:[#allocation2 + $0x274] sm:$0xf]  ;;  %v1500_v13 = vld [vmem:[#allocation2 + $0x278] sm:$0xf0]  ;;  %v1506_v14 = vld [vmem:[#allocation2 + $0x280] sm:$0xf]  ;;  %v1375_v24 = vor.u32 %v1729_v9, %v1372_v10 }
  0x3c   :  { %798 = vmatpush.bf16.msra.mxu2 %v1295_v19  ;;  %v1764_v15 = vld [vmem:[#allocation2 + $0x284] sm:$0xf0]  ;;  %v1699_v17 = vld [vmem:[#allocation2 + $0x84] sm:$0xf]  ;;  %v1252_v18 = vld [vmem:[#allocation2 + $0x88] sm:$0xf0]  ;;  %v1503_v25 = vor.u32 %v1761_v11, %v1500_v13 }
  0x3d   :  { %786 = vmatpush.bf16.msrb.mxu3 %v1223_v23  ;;  %v1745_v19 = vld [vmem:[#allocation2 + $0x1f4] sm:$0xf]  ;;  %v77_v22 = vld.sshfl [vmem:[#allocation1 + $0x20] sm:$0xff pattern:$0x73625140]  ;;  %v1507_v29 = vor.u32 %v1764_v15, %v1506_v14  ;;  %v1255_v33 = vor.u32 %v1699_v17, %v1252_v18  ;;  %s1903_s0 = smov [#allocation7]  }
  0x3e   :  { %760 = vmatpush.bf16.msrb.mxu1 %v1539_v30  ;;  %v1436_v23 = vld [vmem:[#allocation2 + $0x1f8] sm:$0xf0]  ;;  %v1777_v26 = vld [vmem:[#allocation2 + $0x2f4] sm:$0xf]  ;;  %v1727_v28 = vld [vmem:[#allocation2 + $0x164] sm:$0xf] }
  0x3f   :  { %748 = vmatpush.bf16.msrb.mxu0 %v1467_v36  ;;  %1576 = vmatmul.msk.bf16.vlgmr.msrb.gmra.mxu2 %vm688_vm0, %v1978_v6  ;;  %v1564_v27 = vld [vmem:[#allocation2 + $0x2f8] sm:$0xf0]  ;;  %v78_v30 = vld.sshfl [vmem:[#allocation1 + $0x28] sm:$0xff pattern:$0x73625140]  ;;  %v1439_v36 = vor.u32 %v1745_v19, %v1436_v23  ;;  %s1173_s26 = sshll.u32 %s2050_s9, 4  ;;  %s1174_s26 = int_to_ptr.hbm [resolvable:$true] %s1173_s26 }
  0x40   :  { %799 = vmatpush.bf16.msra.mxu2 %v1287_v32  ;;  %v1364_v31 = vld [vmem:[#allocation2 + $0x168] sm:$0xf0]  ;;  %v1982_v32 = vpack.c.bf16 %v77_v22, %v77_v22  ;;  %v1759_v34 = vld [vmem:[#allocation2 + $0x264] sm:$0xf]  ;;  %v1984_v39 = vpack.c.bf16 %v78_v30, %v78_v30  ;;  %v1725_v45 = vld [vmem:[#allocation2 + $0x154] sm:$0xf] }
  0x41   :  { %787 = vmatpush.bf16.msrb.mxu3 %v1215_v37  ;;  %v1492_v35 = vld [vmem:[#allocation2 + $0x268] sm:$0xf0]  ;;  %v1567_v37 = vor.u32 %v1777_v26, %v1564_v27  ;;  %v1743_v38 = vld [vmem:[#allocation2 + $0x1e4] sm:$0xf]  ;;  %v1367_v40 = vor.u32 %v1727_v28, %v1364_v31  ;;  %v1356_v46 = vld [vmem:[#allocation2 + $0x158] sm:$0xf0] }
  0x42   :  { %761 = vmatpush.bf16.msrb.mxu1 %v1531_v43  ;;  %v1428_v41 = vld [vmem:[#allocation2 + $0x1e8] sm:$0xf0]  ;;  %v1775_v42 = vld [vmem:[#allocation2 + $0x2e4] sm:$0xf]  ;;  %v1757_v47 = vld [vmem:[#allocation2 + $0x254] sm:$0xf]  ;;  %v1359_v53 = vor.u32 %v1725_v45, %v1356_v46 }
  0x43   :  { %749 = vmatpush.bf16.msrb.mxu0 %v1459_v48  ;;  %v1556_v43 = vld [vmem:[#allocation2 + $0x2e8] sm:$0xf0]  ;;  %v1484_v48 = vld [vmem:[#allocation2 + $0x258] sm:$0xf0]  ;;  %v1741_v51 = vld [vmem:[#allocation2 + $0x1d4] sm:$0xf] }
  0x44   :  { %800 = vmatpush.bf16.msra.mxu2 %v1279_v44  ;;  %v1495_v44 = vor.u32 %v1759_v34, %v1492_v35  ;;  %v1559_v50 = vor.u32 %v1775_v42, %v1556_v43  ;;  %v1420_v54 = vld [vmem:[#allocation2 + $0x1d8] sm:$0xf0]  ;;  %v1773_v55 = vld [vmem:[#allocation2 + $0x2d4] sm:$0xf]  ;;  %v1723_v59 = vld [vmem:[#allocation2 + $0x144] sm:$0xf] }
  0x45   :  { %788 = vmatpush.bf16.msrb.mxu3 %v1207_v49  ;;  %v1431_v49 = vor.u32 %v1743_v38, %v1428_v41  ;;  %v1548_v56 = vld [vmem:[#allocation2 + $0x2d8] sm:$0xf0]  ;;  %v1348_v60 = vld [vmem:[#allocation2 + $0x148] sm:$0xf0]  ;;  %v1755_v61 = vld [vmem:[#allocation2 + $0x244] sm:$0xf]  ;;  %v1423_v63 = vor.u32 %v1741_v51, %v1420_v54 }
  0x46   :  { %762 = vmatpush.bf16.msrb.mxu1 %v1523_v57  ;;  %v1487_v57 = vor.u32 %v1757_v47, %v1484_v48  ;;  %v1551_v0 = vor.u32 %v1773_v55, %v1548_v56  ;;  %v1771_v3 = vld [vmem:[#allocation2 + $0x2c4] sm:$0xf]  ;;  %v1351_v7 = vor.u32 %v1723_v59, %v1348_v60  ;;  %v1540_v8 = vld [vmem:[#allocation2 + $0x2c8] sm:$0xf0]  ;;  %v1721_v9 = vld [vmem:[#allocation2 + $0x134] sm:$0xf] }
  0x47   :  { %750 = vmatpush.bf16.msrb.mxu0 %v1451_v1  ;;  %v1739_v1 = vld [vmem:[#allocation2 + $0x1c4] sm:$0xf]  ;;  %v1340_v11 = vld [vmem:[#allocation2 + $0x138] sm:$0xf0]  ;;  %v1543_v14 = vor.u32 %v1771_v3, %v1540_v8  ;;  %v1737_v15 = vld [vmem:[#allocation2 + $0x1b4] sm:$0xf] }
  0x48   :  { %801 = vmatpush.bf16.msra.mxu2 %v1271_v62  ;;  %v1476_v62 = vld [vmem:[#allocation2 + $0x248] sm:$0xf0]  ;;  %v1468_v13 = vld [vmem:[#allocation2 + $0x238] sm:$0xf0]  ;;  %v1769_v18 = vld [vmem:[#allocation2 + $0x2b4] sm:$0xf] }
  0x49   :  { %789 = vmatpush.bf16.msrb.mxu3 %v1199_v2  ;;  %v1412_v2 = vld [vmem:[#allocation2 + $0x1c8] sm:$0xf0]  ;;  %v1479_v10 = vor.u32 %v1755_v61, %v1476_v62  ;;  %v1404_v17 = vld [vmem:[#allocation2 + $0x1b8] sm:$0xf0]  ;;  %v1751_v23 = vld [vmem:[#allocation2 + $0x224] sm:$0xf] }
  0x4a   :  { %763 = vmatpush.bf16.msrb.mxu1 %v1515_v12  ;;  %v1753_v12 = vld [vmem:[#allocation2 + $0x234] sm:$0xf]  ;;  %v1532_v19 = vld [vmem:[#allocation2 + $0x2b8] sm:$0xf0]  ;;  %v1332_v22 = vld [vmem:[#allocation2 + $0x128] sm:$0xf0] }
  0x4b   :  { %751 = vmatpush.bf16.msrb.mxu0 %v1443_v20  ;;  %v1471_v20 = vor.u32 %v1753_v12, %v1468_v13  ;;  %v1735_v26 = vld [vmem:[#allocation2 + $0x1a4] sm:$0xf]  ;;  %v1396_v28 = vld [vmem:[#allocation2 + $0x1a8] sm:$0xf0]  ;;  %v1324_v34 = vld [vmem:[#allocation2 + $0x118] sm:$0xf0] }
  0x4c   :  { %802 = vmatpush.bf16.msra.mxu2 %v1263_v16  ;;  %v1343_v16 = vor.u32 %v1721_v9, %v1340_v11  ;;  %v1524_v30 = vld [vmem:[#allocation2 + $0x2a8] sm:$0xf0]  ;;  %v1749_v35 = vld [vmem:[#allocation2 + $0x214] sm:$0xf]  ;;  %v1388_v42 = vld [vmem:[#allocation2 + $0x198] sm:$0xf0] }
  0x4d   :  { %790 = vmatpush.bf16.msrb.mxu3 %v1191_v21  ;;  %v1719_v21 = vld [vmem:[#allocation2 + $0x124] sm:$0xf]  ;;  %v1765_v43 = vld [vmem:[#allocation2 + $0x294] sm:$0xf]  ;;  %v1316_v47 = vld [vmem:[#allocation2 + $0x108] sm:$0xf0] }
  0x4e   :  { %764 = vmatpush.bf16.msrb.mxu1 %v1507_v29  ;;  %752 = vmatmul.bf16.vlgmr.msrb.gmra.mxu0 %v1982_v32  ;;  %v1335_v27 = vor.u32 %v1719_v21, %v1332_v22  ;;  %v1767_v29 = vld [vmem:[#allocation2 + $0x2a4] sm:$0xf]  ;;  %v1572_v51 = vld [vmem:[#allocation2 + $0x308] sm:$0xf0]  ;;  %v1786_v3 = vld [vmem:[#allocation5 + $0x28] sm:$0xff]  ;;  %vm1164_vm3 = vcmask 517120  }
  0x4f   :  { %809 = vmatpush.bf16.msra.mxu0 %v1375_v24  ;;  %v1460_v24 = vld [vmem:[#allocation2 + $0x228] sm:$0xf0]  ;;  %v1527_v38 = vor.u32 %v1767_v29, %v1524_v30  ;;  %v1715_v46 = vld [vmem:[#allocation2 + $0x104] sm:$0xf]  ;;  %v1794_v21 = vld [vmem:[#allocation5 + $0x68] sm:$0xff] }
  0x50   :  { %803 = vmatpush.bf16.msra.mxu2 %v1255_v33  ;;  %791 = vmatmul.bf16.vlgmr.msrb.gmra.mxu3 %v1965_v58  ;;  %v1415_v58 = vor.u32 %v1739_v1, %v1412_v2  ;;  %v1463_v31 = vor.u32 %v1751_v23, %v1460_v24  ;;  %v1717_v33 = vld [vmem:[#allocation2 + $0x114] sm:$0xf]  ;;  %v1747_v48 = vld [vmem:[#allocation2 + $0x204] sm:$0xf]  ;;  %v1319_v55 = vor.u32 %v1715_v46, %v1316_v47  ;;  %v1508_v61 = vld [vmem:[#allocation2 + $0x288] sm:$0xf0] }
  0x51   :  { %835 = vmatpush.bf16.msra.mxu3 %v1503_v25  ;;  %765 = vmatmul.bf16.vlgmr.msrb.gmra.mxu1 %v1984_v39  ;;  %v1535_v25 = vor.u32 %v1769_v18, %v1532_v19  ;;  %v1327_v41 = vor.u32 %v1717_v33, %v1324_v34  ;;  %v1731_v56 = vld [vmem:[#allocation2 + $0x184] sm:$0xf]  ;;  %v1788_v1 = vld [vmem:[#allocation5 + $0x38] sm:$0xff] }
  0x52   :  { %822 = vmatpush.bf16.msra.mxu1 %v1439_v36  ;;  %v1452_v36 = vld [vmem:[#allocation2 + $0x218] sm:$0xf0]  ;;  %v1763_v60 = vld [vmem:[#allocation2 + $0x284] sm:$0xf]  ;;  %v1784_v8 = vld [vmem:[#allocation5 + $0x18] sm:$0xff] }
  0x53   :  { %810 = vmatpush.bf16.msra.mxu0 %v1367_v40  ;;  %804 = vmatmul.bf16.vlgmr.msra.gmra.mxu2 %v1969_v5  ;;  %v1407_v5 = vor.u32 %v1737_v15, %v1404_v17  ;;  %v1733_v40 = vld [vmem:[#allocation2 + $0x194] sm:$0xf]  ;;  %v1455_v45 = vor.u32 %v1749_v35, %v1452_v36  ;;  %v1787_v2 = vld [vmem:[#allocation5 + $0x30] sm:$0xff] }
  0x54   :  { %848 = vmatpush.bf16.msrb.mxu2 %v1567_v37  ;;  %v1399_v37 = vor.u32 %v1735_v26, %v1396_v28  ;;  %v1792_v28 = vld [vmem:[#allocation5 + $0x58] sm:$0xff]  ;;  %v1791_v34 = vld [vmem:[#allocation5 + $0x50] sm:$0xff] }
  0x55   :  { %836 = vmatpush.bf16.msra.mxu3 %v1495_v44  ;;  %v1516_v44 = vld [vmem:[#allocation2 + $0x298] sm:$0xf0] }
  0x56   :  { %823 = vmatpush.bf16.msra.mxu1 %v1431_v49  ;;  %v1444_v49 = vld [vmem:[#allocation2 + $0x208] sm:$0xf0]  ;;  %v1519_v54 = vor.u32 %v1765_v43, %v1516_v44 }
  0x57   :  { %811 = vmatpush.bf16.msra.mxu0 %v1359_v53  ;;  %v1391_v53 = vor.u32 %v1733_v40, %v1388_v42  ;;  %v1447_v59 = vor.u32 %v1747_v48, %v1444_v49 }
  0x58   :  { %849 = vmatpush.bf16.msrb.mxu2 %v1559_v50  ;;  %v1779_v50 = vld [vmem:[#allocation2 + $0x304] sm:$0xf] }
  0x59   :  { %837 = vmatpush.bf16.msra.mxu3 %v1487_v57  ;;  %v1380_v57 = vld [vmem:[#allocation2 + $0x188] sm:$0xf0]  ;;  %v1575_v62 = vor.u32 %v1779_v50, %v1572_v51 }
  0x5a   :  { %824 = vmatpush.bf16.msra.mxu1 %v1423_v63  ;;  %v1383_v63 = vor.u32 %v1731_v56, %v1380_v57 }
  0x5b   :  { %812 = vmatpush.bf16.msra.mxu0 %v1351_v7  ;;  %v1785_v7 = vld [vmem:[#allocation5 + $0x20] sm:$0xff] }
  0x5c   :  { %850 = vmatpush.bf16.msrb.mxu2 %v1551_v0  ;;  %v1511_v0 = vor.u32 %v1763_v60, %v1508_v61 }
  0x5d   :  { %838 = vmatpush.bf16.msra.mxu3 %v1479_v10 }
  0x5e   :  { %825 = vmatpush.bf16.msra.mxu1 %v1415_v58  ;;  %v1796_v58 = vld [vmem:[#allocation5 + $0x78] sm:$0xff] }
  0x5f   :  { %813 = vmatpush.bf16.msra.mxu0 %v1343_v16  ;;  %v1795_v16 = vld [vmem:[#allocation5 + $0x70] sm:$0xff] }
  0x60   :  { %851 = vmatpush.bf16.msrb.mxu2 %v1543_v14 }
  0x61   :  { %839 = vmatpush.bf16.msra.mxu3 %v1471_v20 }
  0x62   :  { %826 = vmatpush.bf16.msra.mxu1 %v1407_v5  ;;  %v1793_v5 = vld [vmem:[#allocation5 + $0x60] sm:$0xff] }
  0x63   :  { %814 = vmatpush.bf16.msra.mxu0 %v1335_v27 }
  0x64   :  { %852 = vmatpush.bf16.msrb.mxu2 %v1535_v25 }
  0x65   :  { %840 = vmatpush.bf16.msra.mxu3 %v1463_v31 }
  0x66   :  { %827 = vmatpush.bf16.msra.mxu1 %v1399_v37 }
  0x67   :  { %815 = vmatpush.bf16.msra.mxu0 %v1327_v41  ;;  %v1789_v41 = vld [vmem:[#allocation5 + $0x40] sm:$0xff] }
  0x68   :  { %853 = vmatpush.bf16.msrb.mxu2 %v1527_v38  ;;  %v1790_v38 = vld [vmem:[#allocation5 + $0x48] sm:$0xff] }
  0x69   :  { %841 = vmatpush.bf16.msra.mxu3 %v1455_v45 }
  0x6a   :  { %828 = vmatpush.bf16.msra.mxu1 %v1391_v53 }
  0x6b   :  { %816 = vmatpush.bf16.msra.mxu0 %v1319_v55 }
  0x6c   :  { %854 = vmatpush.bf16.msrb.mxu2 %v1519_v54 }
  0x6d   :  { %842 = vmatpush.bf16.msra.mxu3 %v1447_v59 }
  0x6e   :  { %829 = vmatpush.bf16.msra.mxu1 %v1383_v63  ;;  %817 = vmatmul.bf16.vlgmr.msra.gmra.mxu0 %v1963_v52  ;;  %v1783_v52 = vld [vmem:[#allocation5 + $0x10] sm:$0xff] }
  0x6f   :  { %868 = vmatpush.bf16.msrb.mxu0 %v1575_v62 }
  0x70   :  { %843 = vmatmul.bf16.vlgmr.msra.gmra.mxu3 %v1982_v32  ;;  %855 = vmatpush.bf16.msrb.mxu2 %v1511_v0  ;;  %v1782_v32 = vld [vmem:[#allocation5 + $0x8] sm:$0xff] }
  0x71   :  { %830 = vmatmul.bf16.vlgmr.msra.gmra.mxu1 %v1967_v4  ;;  %1023 = vmatpush.bf16.msrb.mxu3 %v1796_v58 }
  0x72   :  { %1010 = vmatpush.bf16.msrb.mxu1 %v1788_v1 }
  0x73   :  { %856 = vmatmul.bf16.vlgmr.msrb.gmra.mxu2 %v1984_v39  ;;  %v1781_v39 = vld [vmem:[#allocation5] sm:$0xff] }
  0x75   :  { %1024 = vmatpush.bf16.msrb.mxu3 %v1795_v16 }
  0x76   :  { %1011 = vmatpush.bf16.msrb.mxu1 %v1787_v2  ;;  %v1804_v2 = vld [vmem:[%s2046_s5 + $0x38] sm:$0xff] }
  0x77   :  { %1106 = vmatpush.bf16.msra.mxu0 %v1804_v2 }
  0x79   :  { %1025 = vmatpush.bf16.msrb.mxu3 %v1794_v21 }
  0x7a   :  { %1012 = vmatpush.bf16.msrb.mxu1 %v1786_v3  ;;  %v1803_v3 = vld [vmem:[%s2046_s5 + $0x30] sm:$0xff] }
  0x7b   :  { %1107 = vmatpush.bf16.msra.mxu0 %v1803_v3 }
  0x7d   :  { %1026 = vmatpush.bf16.msrb.mxu3 %v1793_v5 }
  0x7e   :  { %1577 = vmatmul.msk.bf16.vlgmr.msrb.gmra.mxu0 %vm688_vm0, %v1978_v6  ;;  %1013 = vmatpush.bf16.msrb.mxu1 %v1785_v7  ;;  %v192_v6 = vld [vmem:[%s2043_s2] sm:$0x3]  ;;  %v1802_v7 = vld [vmem:[%s2046_s5 + $0x28] sm:$0xff] }
  0x7f   :  { %v194_v14 = vperm.slane %v192_v6, 0  ;;  %v195_v44 = vperm.slane %v192_v6, 1  ;;  %1108 = vmatpush.bf16.msra.mxu0 %v1802_v7  ;;  %v1806_v6 = vld [vmem:[%s2048_s7 + $0x8] sm:$0xff] }
  0x80   :  { %1151 = vmatpush.bf16.msra.mxu2 %v1806_v6 }
  0x81   :  { %1027 = vmatpush.bf16.msrb.mxu3 %v1792_v28 }
  0x82   :  { %1014 = vmatpush.bf16.msrb.mxu1 %v1784_v8  ;;  %v1801_v8 = vld [vmem:[%s2046_s5 + $0x20] sm:$0xff] }
  0x83   :  { %1109 = vmatpush.bf16.msra.mxu0 %v1801_v8 }
  0x85   :  { %1028 = vmatpush.bf16.msrb.mxu3 %v1791_v34 }
  0x86   :  { %1015 = vmatpush.bf16.msrb.mxu1 %v1783_v52  ;;  %v1800_v52 = vld [vmem:[%s2046_s5 + $0x18] sm:$0xff] }
  0x87   :  { %1110 = vmatpush.bf16.msra.mxu0 %v1800_v52 }
  0x89   :  { %1029 = vmatpush.bf16.msrb.mxu3 %v1790_v38 }
  0x8a   :  { %1016 = vmatpush.bf16.msrb.mxu1 %v1782_v32  ;;  %v1799_v32 = vld [vmem:[%s2046_s5 + $0x10] sm:$0xff] }
  0x8b   :  { %1111 = vmatpush.bf16.msra.mxu0 %v1799_v32 }
  0x8d   :  { %1030 = vmatpush.bf16.msrb.mxu3 %v1789_v41 }
  0x8e   :  { %1017 = vmatpush.bf16.msrb.mxu1 %v1781_v39  ;;  %v1798_v39 = vld [vmem:[%s2046_s5 + $0x8] sm:$0xff] }
  0x8f   :  { %1112 = vmatpush.bf16.msra.mxu0 %v1798_v39 }
  0xab   :  { %v701_v9 = vpop.f32.mrf.mxu0 }
  0xac   :  { %v702_v17 = vadd.f32 %v701_v9, %v194_v14 }
  0xae   :  { %v714_v4 = vpop.f32.mrf.mxu1 }
  0xaf   :  { %v715_v19 = vadd.f32 %v714_v4, %v702_v17 }
  0xb2   :  { %v727_v10 = vpop.f32.mrf.mxu2 }
  0xb3   :  { %v740_v11 = vpop.f32.mrf.mxu3  ;;  %v703_v12 = vpop.f32.mrf.mxu0  ;;  %v728_v20 = vadd.f32 %v727_v10, %v715_v19  ;;  %v1797_v10 = vld [vmem:[%s2046_s5] sm:$0xff] }
  0xb4   :  { %1113 = vmatpush.bf16.msra.mxu0 %v1797_v10  ;;  %v1814_v12 = vld [vmem:[%s2045_s4] ss:$0 sm:$0xff] }
  0xb5   :  { %v741_v23 = vadd.f32 %v740_v11, %v728_v20  ;;  %v1805_v11 = vld [vmem:[%s2048_s7] sm:$0xff] }
  0xb6   :  { %v716_v13 = vpop.f32.mrf.mxu1  ;;  %1152 = vmatpush.bf16.msra.mxu2 %v1805_v11 }
  0xba   :  { %v729_v15 = vpop.f32.mrf.mxu2 }
  0xbb   :  { %v742_v18 = vpop.f32.mrf.mxu3 }
  0xbc   :  { %v1815_v18 = vld [vmem:[%s2047_s6] ss:$0 sm:$0xff]  ;;  %s1171_s6 = sshll.u32 %s1903_s0, 4  ;;  %s1172_s6 = int_to_ptr.vmem [resolvable:$true] %s1171_s6 }
  0xc2   :  { %v779_v22 = vpop.f32.mrf.mxu2 }
  0xca   :  { %v781_v30 = vpop.f32.mrf.mxu2 }
  0xcb   :  { %v753_v24 = vpop.f32.mrf.mxu0 }
  0xcc   :  { %v754_v25 = vadd.f32 %v753_v24, %v741_v23  ;;  %v1816_v24 = vld [vmem:[%s2049_s8] ss:$0 sm:$0xff] }
  0xce   :  { %v766_v26 = vpop.f32.mrf.mxu1 }
  0xcf   :  { %v767_v27 = vadd.f32 %v766_v26, %v754_v25  ;;  %v1158_v26 = vlaneseq }
  0xd1   :  { %v780_v29 = vadd.f32 %v779_v22, %v767_v27  ;;  %v1159_v28 = vand.u32 127, %v1158_v26 }
  0xd3   :  { %v874_v31 = vmax.f32 %v780_v29, 0.0  ;;  %v755_v33 = vpop.f32.mrf.mxu0  ;;  %v792_v36 = vpop.f32.mrf.mxu3  ;;  %vm1160_vm2 = vcmp.lt.s32.totalorder %v1159_v28, 32 }
  0xd4   :  { %v793_v45 = vadd.f32 %v792_v36, %v195_v44 }
  0xd5   :  { %v876_v35 = vpack.c.bf16 %v874_v31, %v874_v31 }
  0xd6   :  { %v768_v37 = vpop.f32.mrf.mxu1  ;;  %v805_v40 = vpop.f32.mrf.mxu2 }
  0xd7   :  { %1018 = vmatmul.bf16.vlgmr.msrb.gmra.mxu1 %v876_v35  ;;  %v806_v47 = vadd.f32 %v805_v40, %v793_v45 }
  0xdb   :  { %v794_v42 = vpop.f32.mrf.mxu3 }
  0xde   :  { %v807_v43 = vpop.f32.mrf.mxu2 }
  0xeb   :  { %v818_v46 = vpop.f32.mrf.mxu0 }
  0xec   :  { %v819_v49 = vadd.f32 %v818_v46, %v806_v47 }
  0xee   :  { %v831_v48 = vpop.f32.mrf.mxu1 }
  0xef   :  { %v832_v53 = vadd.f32 %v831_v48, %v819_v49 }
  0xf3   :  { %v844_v50 = vpop.f32.mrf.mxu3  ;;  %v820_v51 = vpop.f32.mrf.mxu0 }
  0xf4   :  { %v845_v55 = vadd.f32 %v844_v50, %v832_v53 }
  0xf6   :  { %v857_v54 = vpop.f32.mrf.mxu2  ;;  %v833_v56 = vpop.f32.mrf.mxu1 }
  0xf7   :  { %v858_v57 = vadd.f32 %v857_v54, %v845_v55 }
  0xfb   :  { %v846_v59 = vpop.f32.mrf.mxu3  ;;  %v870_v60 = vpop.f32.mrf.mxu0 }
  0xfc   :  { %v871_v61 = vadd.f32 %v870_v60, %v858_v57 }
  0xfe   :  { %v859_v62 = vpop.f32.mrf.mxu2  ;;  %v875_v63 = vmax.f32 %v871_v61, 0.0 }
 0x100   :  { %v877_v0 = vpack.c.bf16 %v875_v63, %v875_v63 }
 0x102   :  { %1031 = vmatmul.bf16.vlgmr.msrb.gmra.mxu3 %v877_v0 }
 0x103   :  { %v872_v1 = vpop.f32.mrf.mxu0 }
 0x154   :  { %v1019_v9 = vpop.f32.mrf.mxu1 }
 0x155   :  { %v1020_v13 = vadd.f32 %v1814_v12, %v1019_v9 }
 0x15c   :  { %v1021_v4 = vpop.f32.mrf.mxu1 }
 0x185   :  { %v1032_v58 = vpop.f32.mrf.mxu3 }
 0x186   :  { %v1033_v14 = vadd.f32 %v1032_v58, %v1020_v13 }
 0x188   :  { %v1036_v15 = vmax.f32 %v1033_v14, 0.0 }
 0x18a   :  { %v1037_v16 = vpack.c.bf16 %v1036_v15, %v1036_v15 }
 0x18c   :  { %1114 = vmatmul.bf16.vlgmr.msra.gmra.mxu0 %v1037_v16 }
 0x18d   :  { %v1034_v17 = vpop.f32.mrf.mxu3 }
 0x209   :  { %v1115_v19 = vpop.f32.mrf.mxu0 }
 0x20a   :  { %v1116_v20 = vadd.f32 %v1815_v18, %v1115_v19 }
 0x20c   :  { %v1119_v21 = vmax.f32 %v1116_v20, 0.0 }
 0x20e   :  { %v1120_v22 = vpack.c.bf16 %v1119_v21, %v1119_v21 }
 0x210   :  { %1682 = vmatmul.msk.bf16.vlgmr.msra.gmra.mxu2 %vm1141_vm1, %v1120_v22 }
 0x211   :  { %v1117_v23 = vpop.f32.mrf.mxu0 }
 0x293   :  { %v1154_v5 = vpop.f32.mrf.mxu2 }
 0x294   :  { %v1155_v25 = vadd.f32 %v1816_v24, %v1154_v5 }
 0x296   :  { %v1161_v27 = vmul.f32 1.442695, %v1155_v25 }
 0x298   :  { %1817 = vpow2.f32 %v1161_v27 }
 0x29b   :  { %v1156_v29 = vpop.f32.mrf.mxu2 }
 0x29e   :  { %v1818_v30 = vpop.eup %1817 }
 0x29f   :  { %v1163_v31 = vsel %vm1160_vm2, %v1155_v25, %v1818_v30 }
 0x2a0   :  { %1165 = vst.msk [vmem:[#allocation7] sm:$0x3] %vm1164_vm3, %v1163_v31 }
 0x2a1   :  { %1176 = dma.vmem_to_hbm [thread:$0]  %s1172_s6, 32, %s1174_s26, [#allocation4]  }
 0x2a2   :  { %1895 = dma.done.wait [#allocation4], 32  }
 0x2a3   :  { %1896 = vsyncadd [#allocation4], 4294967264 }
 0x2a4   :  { %1181 = vsyncpa [#allocation3], 1 }
 0x2a5   :  { %1182 = vsyncpa [#allocation6], 1 }
 0x2a6   :  { %1183 = vsyncpa [#allocation4], 1 }

</bundles_post_ra>
